<compile_context>
chip_gen: v7x
topology: tpu7x:2x2x1
jax: 0.10.0
libtpu: 0.0.40
codegen_flags: <defaults>
</compile_context>

<pallas_src>
import math

import jax
import jax.numpy as jnp
from jax import lax
from jax.experimental import pallas as pl
from jax.experimental.pallas import tpu as pltpu


_LANE = 128
_TARGET_BLOCK_BYTES = 4 << 20          # ~4 MiB per pipelined buffer
_SMALL_BATCH_BYTES = 8 << 20           # whole-batch-in-VMEM path threshold
_VMEM_LIMIT_BYTES = 40 * 1024 * 1024   # 6 x 4 MiB buffers + slack; < v7x 64 MiB


def _cdiv(a, b):
    return (a + b - 1) // b


def _round_up(x, m):
    return ((x + m - 1) // m) * m


def _sublane(dtype):
    """Native sublane packing: 8 rows (4-byte), 16 (2-byte), 32 (1-byte)."""
    itemsize = jnp.dtype(dtype).itemsize
    return max(8, 8 * (4 // itemsize))


def _block_rows(rows, dtype):
    """Rows per pixel-chunk block: <= ~_TARGET_BLOCK_BYTES, sublane-aligned.
    Returns full `rows` when it already fits (full-dim blocks are always
    legal, even when not sublane-aligned)."""
    itemsize = jnp.dtype(dtype).itemsize
    sub = _sublane(dtype)
    target = max(sub, _TARGET_BLOCK_BYTES // (_LANE * itemsize))
    if rows <= target:
        return rows
    return max(sub, (target // sub) * sub)


# ----------------------------- image mixing kernels ---------------------------

def _mix_batch_vmem_kernel(idx_ref, lam_ref, x_ref, o_ref):
    # Small-batch path: the whole flattened batch is resident in VMEM.
    #   x_ref / o_ref: (N, rows, 128)
    #   idx_ref:       (N,) int32 permutation in SMEM (scalar prefetch)
    #   lam_ref:       (1,) f32 in SMEM (scalar prefetch)
    lam = lam_ref[0]
    lam_x = lam.astype(x_ref.dtype)
    one_minus = (1.0 - lam).astype(x_ref.dtype)
    n = x_ref.shape[0]

    def body(i, carry):
        xi = x_ref[i]                       # (rows, 128)
        xp = x_ref[idx_ref[i]]              # permuted element, read from VMEM
        o_ref[i] = (xi * lam_x + xp * one_minus).astype(o_ref.dtype)
        return carry

    lax.fori_loop(0, n, body, 0)


def _mix_gather_kernel(idx_ref, lam_ref, x_ref, xp_ref, o_ref):
    # Large-batch path:
    #   x_ref : (1, block_rows, 128) pixel chunk of batch element i
    #   xp_ref: (1, block_rows, 128) same chunk of element indices[i]
    #           (data-dependent BlockSpec index_map from SMEM-prefetched idx)
    x = x_ref[...]
    xp = xp_ref[...]
    lam = lam_ref[0]
    lam_x = lam.astype(x.dtype)
    one_minus = (1.0 - lam).astype(x.dtype)
    o_ref[...] = (x * lam_x + xp * one_minus).astype(o_ref.dtype)


def _flatten_lane_dense(x, row_align):
    """Reshape (N, ...) -> (N, rows, 128) with rows a multiple of row_align.
    Pads only when C*H*W is not already a multiple of row_align*128 (rare)."""
    N = x.shape[0]
    flat = math.prod(x.shape[1:])
    rows = _round_up(_cdiv(flat, _LANE), row_align)
    pad = rows * _LANE - flat
    xf = x.reshape(N, flat)
    if pad:
        # TODO(synk): uncommon shape (flat not a multiple of row_align*128):
        # this jnp.pad is one extra XLA copy; aligned shapes pay nothing.
        xf = jnp.pad(xf, ((0, 0), (0, pad)))
    return xf.reshape(N, rows, _LANE), rows, flat, pad


def _mixup_images_small(x, indices, lam_arr):
    """Whole batch fits in VMEM: single kernel invocation, permutation applied
    by in-kernel dynamic indexing.  HBM traffic = 2x (1 read + 1 write)."""
    shape = x.shape
    N = shape[0]
    dtype = x.dtype
    itemsize = jnp.dtype(dtype).itemsize

    # Per-element slabs must be sublane-aligned for dynamic leading-dim indexing.
    xf, rows, flat, pad = _flatten_lane_dense(x, _sublane(dtype))
    total_bytes = N * rows * _LANE * itemsize

    out = pl.pallas_call(
        _mix_batch_vmem_kernel,
        out_shape=jax.ShapeDtypeStruct((N, rows, _LANE), dtype),
        grid_spec=pltpu.PrefetchScalarGridSpec(
            num_scalar_prefetch=2,                        # (indices, lam) -> SMEM
            grid=(1,),
            in_specs=[pl.BlockSpec((N, rows, _LANE),
                                   lambda i, idx, lam: (0, 0, 0))],
            out_specs=pl.BlockSpec((N, rows, _LANE),
                                   lambda i, idx, lam: (0, 0, 0)),
        ),
        compiler_params=pltpu.CompilerParams(
            dimension_semantics=("arbitrary",),
            vmem_limit_bytes=_VMEM_LIMIT_BYTES),
        cost_estimate=pl.CostEstimate(
            flops=3 * N * rows * _LANE, transcendentals=0,
            bytes_accessed=2 * total_bytes),
    )(indices, lam_arr, xf)

    if pad:
        out = out.reshape(N, rows * _LANE)[:, :flat]
    return out.reshape(shape)


def _mixup_images_large(x, indices, lam_arr):
    """Large batches: per-element grid + pixel-chunk grid; the permutation is a
    data-dependent BlockSpec index_map, so image data is never gathered in
    XLA (3x image bytes of HBM traffic total).  Ragged pixel tails are handled
    by the grid (partial last block), never by padding the tensor."""
    shape = x.shape
    N = shape[0]
    dtype = x.dtype
    itemsize = jnp.dtype(dtype).itemsize

    xf, rows, flat, pad = _flatten_lane_dense(x, 1)   # only lane (128) alignment
    block_rows = _block_rows(rows, dtype)
    n_chunks = _cdiv(rows, block_rows)
    total_bytes = N * rows * _LANE * itemsize

    out = pl.pallas_call(
        _mix_gather_kernel,
        out_shape=jax.ShapeDtypeStruct((N, rows, _LANE), dtype),
        grid_spec=pltpu.PrefetchScalarGridSpec(
            num_scalar_prefetch=2,                        # (indices, lam) -> SMEM
            grid=(N, n_chunks),
            in_specs=[
                pl.BlockSpec((1, block_rows, _LANE),
                             lambda i, j, idx, lam: (i, j, 0)),
                pl.BlockSpec((1, block_rows, _LANE),
                             lambda i, j, idx, lam: (idx[i], j, 0)),
            ],
            out_specs=pl.BlockSpec((1, block_rows, _LANE),
                                   lambda i, j, idx, lam: (i, j, 0)),
        ),
        compiler_params=pltpu.CompilerParams(
            dimension_semantics=("parallel", "parallel"),
            vmem_limit_bytes=_VMEM_LIMIT_BYTES),
        cost_estimate=pl.CostEstimate(
            flops=3 * N * rows * _LANE, transcendentals=0,
            bytes_accessed=3 * total_bytes),
    )(indices, lam_arr, xf, xf)

    out = out.reshape(N, rows * _LANE)
    if pad:
        out = out[:, :flat]
    return out.reshape(shape)


def mixup_images(images_nchw, indices, lam, *,
                 small_threshold_bytes=_SMALL_BATCH_BYTES):
    if images_nchw.ndim != 4:
        raise ValueError("expected NCHW images")
    lam_arr = jnp.reshape(lam, (1,)).astype(jnp.float32)
    total_bytes = (math.prod(images_nchw.shape) *
                   jnp.dtype(images_nchw.dtype).itemsize)
    if total_bytes < small_threshold_bytes:
        return _mixup_images_small(images_nchw, indices, lam_arr)
    return _mixup_images_large(images_nchw, indices, lam_arr)


# ----------------------------- label mixing kernel ----------------------------

def _mix_labels_kernel(lam_ref, lab_ref, labp_ref, o_ref):
    # lab_ref / labp_ref: (n_tile, 1) int32 labels (original / permuted)
    # o_ref             : (n_tile, nc_pad) f32 mixed one-hot labels
    lam = lam_ref[0]
    class_iota = lax.broadcasted_iota(jnp.int32, o_ref.shape, 1)
    oh = (lab_ref[...] == class_iota).astype(jnp.float32)
    ohp = (labp_ref[...] == class_iota).astype(jnp.float32)
    o_ref[...] = lam * oh + (1.0 - lam) * ohp


def mixup_labels(labels, indices, lam, num_classes):
    N = labels.shape[0]
    # Pad the class (lane) dim to a multiple of 128 for a lane-dense store.
    nc_pad = max(_LANE, _round_up(num_classes, _LANE))
    lab = labels.astype(jnp.int32).reshape(N, 1)
    lab_perm = jnp.take(lab, indices, axis=0)    # gather of N ints: glue in JAX
    lam_arr = jnp.reshape(lam, (1,)).astype(jnp.float32)

    # Tile the batch dim so in/out DMA pipelines for large N; full batch for
    # small N (labels are tiny anyway).
    n_tile = 256 if (N % 256 == 0 and N > 256) else N

    out = pl.pallas_call(
        _mix_labels_kernel,
        out_shape=jax.ShapeDtypeStruct((N, nc_pad), jnp.float32),
        grid_spec=pltpu.PrefetchScalarGridSpec(
            num_scalar_prefetch=1,                         # lam -> SMEM
            grid=(N // n_tile,),
            in_specs=[
                pl.BlockSpec((n_tile, 1), lambda i, lam: (i, 0)),
                pl.BlockSpec((n_tile, 1), lambda i, lam: (i, 0)),
            ],
            out_specs=pl.BlockSpec((n_tile, nc_pad), lambda i, lam: (i, 0)),
        ),
        compiler_params=pltpu.CompilerParams(
            dimension_semantics=("parallel",),
            vmem_limit_bytes=_VMEM_LIMIT_BYTES),
    )(lam_arr, lab, lab_perm)

    if nc_pad == num_classes:
        return out
    # TODO(synk): trailing (N, num_classes) slice is a tiny XLA copy; it
    # disappears when num_classes is a multiple of 128.
    return out[:, :num_classes]


# ----------------------------- MixUp "module" ---------------------------------

class MixUpPallas:
    def __init__(self, alpha=1.0, num_classes=None):
        self.alpha = alpha
        self.num_classes = num_classes

    def __call__(self, key, images, labels):
        if images.ndim != 4:
            raise ValueError(f"Expected 4D input but got {images.ndim}D input")
        batch_size = images.shape[0]
        if not batch_size > 1 or self.alpha <= 0:
            # NOTE: like the PyTorch module, the disabled path returns the raw
            # (integer) labels even when num_classes is set.
            return images, labels

        k_lam, k_perm = jax.random.split(key)
        lam = jax.random.beta(k_lam, self.alpha, self.alpha, dtype=jnp.float32)
        indices = jax.random.permutation(k_perm, batch_size).astype(jnp.int32)

        mixed_images = mixup_images(images, indices, lam)
        if self.num_classes is not None:
            mixed_labels = mixup_labels(labels, indices, lam, self.num_classes)
            return mixed_images, mixed_labels
        # TODO(synk): tuple-target branch (labels, labels[indices], lam) has no
        # kernel-side compute; returned directly from JAX.
        return mixed_images, (labels, labels[indices], lam)


# ----------------------------------- main --------------------------------------

if __name__ == "__main__":
    key = jax.random.PRNGKey(0)
    k_img, k_lab, k_mix = jax.random.split(key, 3)

    B, C, H, W = 2, 4, 16, 16
    num_classes = 10

    images = jax.random.normal(k_img, (B, C, H, W), dtype=jnp.float32)
    labels = jax.random.randint(k_lab, (B,), 0, num_classes, dtype=jnp.int32)

    mixer = MixUpPallas(alpha=1.0, num_classes=num_classes)
    mixed_images, mixed_labels = mixer(k_mix, images, labels)
    mixed_images = jax.block_until_ready(mixed_images)
    mixed_labels = jax.block_until_ready(mixed_labels)

    # Plain-JAX reference with the same lam / indices.
    k_lam, k_perm = jax.random.split(k_mix)
    lam = jax.random.beta(k_lam, 1.0, 1.0, dtype=jnp.float32)
    indices = jax.random.permutation(k_perm, B).astype(jnp.int32)
    ref_images = lam * images + (1.0 - lam) * images[indices]
    one_hot = jax.nn.one_hot(labels, num_classes, dtype=jnp.float32)
    ref_labels = lam * one_hot + (1.0 - lam) * one_hot[indices]

    assert mixed_images.shape == (B, C, H, W)
    assert mixed_labels.shape == (B, num_classes)
    assert jnp.allclose(mixed_images, ref_images, atol=1e-6)
    assert jnp.allclose(mixed_labels, ref_labels, atol=1e-6)

    # Also exercise the gather-free large-batch path (data-dependent index_map)
    # on the same inputs by forcing the threshold to 0.
    mixed_images_large = jax.block_until_ready(
        mixup_images(images, indices, lam, small_threshold_bytes=0))
    assert jnp.allclose(mixed_images_large, ref_images, atol=1e-6)

    print("KERNEL_OK")
</pallas_src>

<mosaic_0001>
module attributes {stable_mosaic.version = 11 : i64} {
  func.func @_mix_batch_vmem_kernel(%arg0: i32, %arg1: memref<2xi32, #tpu.memory_space<smem>>, %arg2: memref<1xf32, #tpu.memory_space<smem>>, %arg3: memref<2x8x128xf32, #tpu.memory_space<vmem>>, %arg4: memref<2x8x128xf32, #tpu.memory_space<vmem>>) attributes {dimension_semantics = [#tpu.dimension_semantics<arbitrary>], iteration_bounds = array<i64: 1>, scalar_prefetch = 2 : i64, scratch_operands = 0 : i64, tpu.core_type = #tpu.core_type<tc>, window_params = [{pipeline_mode = #tpu.pipeline_mode<synchronous>, transform_indices = @transform_0, window_bounds = array<i64: 2, 8, 128>}, {pipeline_mode = #tpu.pipeline_mode<synchronous>, transform_indices = @transform_1, window_bounds = array<i64: 2, 8, 128>}]} {
    %c0 = arith.constant 0 : index
    %0 = memref.load %arg2[%c0] : memref<1xf32, #tpu.memory_space<smem>>
    %cst = arith.constant 1.000000e+00 : f32
    %1 = arith.subf %cst, %0 : f32
    %c0_i32 = arith.constant 0 : i32
    %c2_i32 = arith.constant 2 : i32
    %2 = arith.addi %c0_i32, %c2_i32 : i32
    %c1_i32 = arith.constant 1 : i32
    scf.for %arg5 = %c0_i32 to %2 step %c1_i32  : i32 {
      %3 = arith.index_cast %arg5 : i32 to index
      %c0_1 = arith.constant 0 : index
      %c0_2 = arith.constant 0 : index
      %4 = vector.load %arg3[%3, %c0_1, %c0_2] : memref<2x8x128xf32, #tpu.memory_space<vmem>>, vector<1x8x128xf32>
      %5 = vector.shape_cast %4 : vector<1x8x128xf32> to vector<8x128xf32>
      %6 = arith.index_cast %arg5 : i32 to index
      %7 = memref.load %arg1[%6] : memref<2xi32, #tpu.memory_space<smem>>
      %8 = arith.index_cast %7 : i32 to index
      %c0_3 = arith.constant 0 : index
      %c0_4 = arith.constant 0 : index
      %9 = vector.load %arg3[%8, %c0_3, %c0_4] : memref<2x8x128xf32, #tpu.memory_space<vmem>>, vector<1x8x128xf32>
      %10 = vector.shape_cast %9 : vector<1x8x128xf32> to vector<8x128xf32>
      %11 = vector.broadcast %0 : f32 to vector<8x128xf32>
      %12 = arith.mulf %5, %11 : vector<8x128xf32>
      %13 = vector.broadcast %1 : f32 to vector<8x128xf32>
      %14 = arith.mulf %10, %13 : vector<8x128xf32>
      %15 = arith.addf %12, %14 : vector<8x128xf32>
      %16 = arith.index_cast %arg5 : i32 to index
      %c0_5 = arith.constant 0 : index
      %c0_6 = arith.constant 0 : index
      %17 = vector.load %arg4[%16, %c0_5, %c0_6] : memref<2x8x128xf32, #tpu.memory_space<vmem>>, vector<1x8x128xf32>
      %18 = vector.shape_cast %17 : vector<1x8x128xf32> to vector<8x128xf32>
      %19 = vector.shape_cast %15 : vector<8x128xf32> to vector<1x8x128xf32>
      tpu.vector_store %arg4[%16, %c0_5, %c0_6], %19 {strides = array<i32>} : memref<2x8x128xf32, #tpu.memory_space<vmem>>, vector<1x8x128xf32>,
    }
    %c2_i32_0 = arith.constant 2 : i32
    return
  }
  func.func @transform_0(%arg0: i32, %arg1: memref<2xi32, #tpu.memory_space<smem>>, %arg2: memref<1xf32, #tpu.memory_space<smem>>) -> (i32, i32, i32) {
    %c0_i32 = arith.constant 0 : i32
    %c0_i32_0 = arith.constant 0 : i32
    %c0_i32_1 = arith.constant 0 : i32
    %c0_i32_2 = arith.constant 0 : i32
    return %c0_i32, %c0_i32_0, %c0_i32_1 : i32, i32, i32
  }
  func.func @transform_1(%arg0: i32, %arg1: memref<2xi32, #tpu.memory_space<smem>>, %arg2: memref<1xf32, #tpu.memory_space<smem>>) -> (i32, i32, i32) {
    %c0_i32 = arith.constant 0 : i32
    %c0_i32_0 = arith.constant 0 : i32
    %c0_i32_1 = arith.constant 0 : i32
    %c0_i32_2 = arith.constant 0 : i32
    return %c0_i32, %c0_i32_0, %c0_i32_1 : i32, i32, i32
  }
}

</mosaic_0001>

<bundles_post_ra>
// kernel: tpu_custom_call.1
= control target key start
LH: loop header
LB: loop body
LE: loop exit
PB: predicated region body
PF: predicated region fallthrough
CT: control target
= control target key end

     0   :  { %s231_s0 = inlined_call_operand.vmem [shape: s32[2], index: 0, kind: input, shape index: {}]   ;;  %s232_s1 = inlined_call_operand.<no memory space> [shape: f32[1], index: 1, kind: input, shape index: {}]   ;;  %s233_s2 = inlined_call_operand.hbm [shape: f32[2,8,128], index: 2, kind: input, shape index: {}]   ;;  %s234_s3 = inlined_call_operand.hbm [shape: f32[2,8,128], index: 3, kind: output, shape index: {}]  }
   0x1   :  { %s8_s14 = sshll.u32 %s231_s0, 4  ;;  %s9_s14 = int_to_ptr.vmem [resolvable:$true] %s8_s14 }
   0x2   :  { %s97_s15 = scalar_lea.vmem %s9_s14, 16  ;;  %p102_p1 = scmp.lt.s32.totalorder %s9_s14, %s9_s14 }
   0x3   :  { %p98_p0 = scmp.ne.s32.totalorder %s9_s14, %s97_s15  ;;  %p103_p2 = scmp.lt.s32.totalorder %s97_s15, %s97_s15 }
   0x5   :  { %p104_p3 = por %p103_p2, %p102_p1 }
   0x7   :  { %p105_p4 = pnand %p104_p3, %p98_p0 }
   0x9   :  { %108 = shalt.err (!%p105_p4)  }
   0xa   :  { %s167_s16 = smov [#allocation3]  }
   0xb   :  { %11 = dma.vmem_to_smem %s9_s14, 16, %s167_s16, [#allocation2] }
   0xc   :  { %157 = dma.done.wait [#allocation2], 16 }
   0xd   :  { %158 = vsyncadd [#allocation2], 4294967280 }
   0xe   :  { %14 = sfence }
   0xf   :  { %15 = vsyncpa [#allocation6], 0 }
  0x10   :  { %16 = vsyncpa [#allocation7], 0  ;;  %s168_s17 = smov [#allocation5]   ;;  %s109_s20 = scalar_lea.hbm %s233_s2, 256 }
  0x11   :  { %s22_s18 = sshll.u32 %s168_s17, 4  ;;  %p110_p5 = scmp.ne.s32.totalorder %s233_s2, %s109_s20  ;;  %s23_s18 = int_to_ptr.vmem [resolvable:$true] %s22_s18 }
  0x12   :  { %p113_p6 = scmp.lt.u32.totalorder %s109_s20, %s233_s2 }
  0x14   :  { %p115_p7 = pnand %p113_p6, %p110_p5 }
  0x16   :  { %118 = shalt.err (!%p115_p7)
}
  0x17   :  { %s119_s25 = scalar_lea.vmem %s23_s18, 256  ;;  %p124_p9 = scmp.lt.s32.totalorder %s23_s18, %s23_s18 }
  0x18   :  { %p120_p8 = scmp.ne.s32.totalorder %s23_s18, %s119_s25  ;;  %p125_p10 = scmp.lt.s32.totalorder %s119_s25, %s119_s25 }
  0x1a   :  { %p126_p11 = por %p125_p10, %p124_p9 }
  0x1c   :  { %p127_p12 = pnand %p126_p11, %p120_p8 }
  0x1e   :  { %130 = shalt.err (!%p127_p12)
}
  0x1f   :  { %s169_s26 = smov 128   ;;  %s170_s27 = smov 8  }
  0x20   :  { %28 = dma.hbm_to_vmem [thread:$0]  %s233_s2, 256, %s23_s18, [#allocation6], %s169_s26, %s169_s26, %s170_s27  }
  0x21   :  { %159 = dma.done.wait [#allocation6], 256  }
  0x22   :  { %160 = vsyncadd [#allocation6], 4294967040  ;;  %s33_s5 = ssub.f32 1.0, %s232_s1  ;;  %s163_s6 = smov 0  }
  0x23 LB: > { %s82_s7 = sshll.u32 %s165_s6, 3  ;;  %s43_s8 = sld [smem:[#allocation3 + %s165_s6]]  ;;  %v47_v1 = vstv %s232_s1  ;;  %s165_s6 = sphi %s163_s6, %s39_s6  }
  0x24   : > { %s41_s9 = scalar_lea.vmem [#allocation5], %s82_s7  ;;  %v49_v2 = vstv %s33_s5  ;;  %s52_s13 = scalar_lea.vmem [#allocation8], %s82_s7 }
  0x25   : > { %v42_v0 = vld [vmem:[%s41_s9] sm:$0xff]  ;;  %s39_s6 = sadd.s32 1, %s165_s6  }
  0x26   : > { %v48_v3 = vmul.f32 %v47_v1, %v42_v0  ;;  %p36_p13 = scmp.ge.s32.totalorder %s39_s6, 2  }
  0x27   :  { %s171_s14 = smov (%p36_p13), [#allocation8]  }
  0x28   :  { %s59_s15 = sshll.u32 (%p36_p13), %s171_s14, 4  ;;  %s60_s15 = int_to_ptr.vmem [resolvable:$true] %s59_s15 }
  0x29   : > { %s83_s12 = sshll.u32 %s43_s8, 3  ;;  %s131_s16 = scalar_lea.vmem (%p36_p13), %s60_s15, 256 }
  0x2a   : > { %s45_s2 = scalar_lea.vmem [#allocation5], %s83_s12  ;;  %38 = sbr.rel (!%p36_p13) target bundleno = 35 (0x23), region = 38 }
  0x2b   : > { %v46_v4 = vld [vmem:[%s45_s2] sm:$0xff]  ;;  %p132_p0 = scmp.ne.s32.totalorder (%p36_p13), %s60_s15, %s131_s16  ;;  %p136_p1 = scmp.lt.s32.totalorder (%p36_p13), %s60_s15, %s60_s15 }
  0x2c   : > { %v50_v5 = vmul.f32 %v49_v2, %v46_v4  ;;  %p137_p2 = scmp.lt.s32.totalorder (%p36_p13), %s131_s16, %s131_s16 }
  0x2e   : > { %v51_v6 = vadd.f32 %v50_v5, %v48_v3  ;;  %p138_p3 = por (%p36_p13), %p137_p2, %p136_p1 }
  0x30   : > { %53 = vst [vmem:[%s52_s13] sm:$0xff] %v51_v6  ;;  %p139_p4 = pnand (%p36_p13), %p138_p3, %p132_p0 }
  0x32   :  { %142 = shalt.err (!%p139_p4)
}
  0x33   :  { %s143_s19 = scalar_lea.hbm %s234_s3, 256 }
  0x34   :  { %p144_p5 = scmp.ne.s32.totalorder %s234_s3, %s143_s19  ;;  %p147_p6 = scmp.lt.u32.totalorder %s143_s19, %s234_s3 }
  0x36   :  { %p149_p7 = pnand %p147_p6, %p144_p5 }
  0x38   :  { %152 = shalt.err (!%p149_p7)
}
  0x39   :  { %65 = dma.vmem_to_hbm [thread:$0]  %s60_s15, 256, %s234_s3, [#allocation7], %s169_s26, %s169_s26, %s170_s27  }
  0x3a   :  { %161 = dma.done.wait [#allocation7], 256  }
  0x3b   :  { %162 = vsyncadd [#allocation7], 4294967040 }
  0x3c   :  { %69 = vsyncpa [#allocation6], 1 }
  0x3d   :  { %70 = vsyncpa [#allocation7], 1 }

</bundles_post_ra>
